<compile_context>
chip_gen: v5e
topology: v5e:2x2
jax: 0.10.0
libtpu: 0.0.40
codegen_flags: <defaults>
</compile_context>

<pallas_src>
import jax
import jax.numpy as jnp
from jax.experimental import pallas as pl
from jax.experimental.pallas import tpu as pltpu


def resblock_kernel(x_ref, w_ref, b_ref, xres_ref, o_ref):
    # x_ref:    (TM, Hp)  full reduction dim, native dtype (bf16/f32)
    # w_ref:    (Hp, TN)  weight panel, [in, out], native dtype
    # b_ref:    (1,  TN)  bias panel, already f32
    # xres_ref: (TM, TN)  residual slice matching the output tile
    # o_ref:    (TM, TN)
    acc = jnp.dot(x_ref[...], w_ref[...], preferred_element_type=jnp.float32)
    h = acc + b_ref[...]                       # f32 accumulator + f32 bias
    silu = h * jax.nn.sigmoid(h)               # SiLU in f32 (VPU + EUP)
    o_ref[...] = (xres_ref[...].astype(jnp.float32) + silu).astype(o_ref.dtype)


def _round_up(x, m):
    return (x + m - 1) // m * m


def resblock_forward(x, weight, bias, *, tile_m=256, tile_n=256):
    """x: (..., H); weight: (H, H) PyTorch layout (out, in); bias: (H,)."""
    orig_shape = x.shape
    hidden = orig_shape[-1]
    x2d = x.reshape(-1, hidden)
    m = x2d.shape[0]
    dtype = x2d.dtype

    sublane = 16 if dtype == jnp.bfloat16 else 8

    # Lane-dense feature dim: pad H to a multiple of 128. Zero-padded weight
    # rows/cols and bias entries keep the math exact; padded outputs are
    # sliced off at the end.
    h_pad = _round_up(hidden, 128)
    tn = min(tile_n, h_pad)

    # Big M tiles (multiple of the dtype sublane tile), clamped to the row
    # count; pad M so the grid divides exactly (no runtime tail masking).
    tm = max(sublane, min(_round_up(tile_m, sublane), _round_up(m, sublane)))
    m_pad = _round_up(m, tm)

    # PyTorch weight is (out, in) -> transpose to (in, out) so kernel does x @ W.
    # Keep matmul operands in the activation dtype (bf16-native MXU path).
    w_t = weight.T.astype(dtype)
    b1d = bias
    if h_pad != hidden:
        x2d = jnp.pad(x2d, ((0, 0), (0, h_pad - hidden)))
        w_t = jnp.pad(w_t, ((0, h_pad - hidden), (0, h_pad - hidden)))
        b1d = jnp.pad(b1d, (0, h_pad - hidden))
    if m_pad != m:
        x2d = jnp.pad(x2d, ((0, m_pad - m), (0, 0)))
    # Bias cast to f32 once, outside the per-tile hot path.
    b2d = b1d.reshape(1, h_pad).astype(jnp.float32)

    grid = (m_pad // tm, h_pad // tn)

    cost = pl.CostEstimate(
        flops=2 * m_pad * h_pad * h_pad,
        transcendentals=m_pad * h_pad,                       # sigmoid
        bytes_accessed=(2 * x2d.size * x2d.dtype.itemsize    # x (matmul + residual)
                        + w_t.size * w_t.dtype.itemsize
                        + b2d.size * b2d.dtype.itemsize
                        + m_pad * h_pad * dtype.itemsize),   # output
    )

    out = pl.pallas_call(
        resblock_kernel,
        out_shape=jax.ShapeDtypeStruct((m_pad, h_pad), dtype),
        grid_spec=pltpu.PrefetchScalarGridSpec(
            num_scalar_prefetch=0,
            grid=grid,
            in_specs=[
                # Full-K activation tile; block index constant over j -> no re-fetch.
                pl.BlockSpec((tm, h_pad), lambda i, j: (i, 0)),
                # Weight column panel, streamed over j (bounded VMEM on v7x).
                pl.BlockSpec((h_pad, tn), lambda i, j: (0, j)),
                # Bias panel (f32).
                pl.BlockSpec((1, tn), lambda i, j: (0, j)),
                # Residual slice aligned with the output tile.
                pl.BlockSpec((tm, tn), lambda i, j: (i, j)),
            ],
            out_specs=pl.BlockSpec((tm, tn), lambda i, j: (i, j)),
        ),
        compiler_params=pltpu.CompilerParams(
            dimension_semantics=("parallel", "parallel")),
        cost_estimate=cost,
    )(x2d, w_t, b2d, x2d)

    return out[:m, :hidden].reshape(orig_shape)


if __name__ == "__main__":
    batch, seq, hidden = 2, 8, 32
    key = jax.random.PRNGKey(0)
    kx, kw, kb = jax.random.split(key, 3)

    x = jax.random.normal(kx, (batch, seq, hidden), dtype=jnp.float32)
    bias = jax.random.uniform(kb, (hidden,), dtype=jnp.float32,
                              minval=-1.0 / (hidden ** 0.5),
                              maxval=1.0 / (hidden ** 0.5))

    def ref(x, w, b):
        h = x @ w.T + b
        return x + h * jax.nn.sigmoid(h)

    # Case 1: module's actual init (nn.init.zeros_ on the weight).
    w_zero = jnp.zeros((hidden, hidden), dtype=jnp.float32)       # (out, in)
    y0 = jax.block_until_ready(resblock_forward(x, w_zero, bias))
    assert jnp.allclose(y0, ref(x, w_zero, bias), atol=1e-5, rtol=1e-5)

    # Case 2: random weight so the matmul/transpose path is actually exercised.
    w_rand = jax.random.normal(kw, (hidden, hidden), dtype=jnp.float32) * 0.05
    y1 = jax.block_until_ready(resblock_forward(x, w_rand, bias))
    assert jnp.allclose(y1, ref(x, w_rand, bias), atol=1e-4, rtol=1e-4)

    print("KERNEL_OK")
</pallas_src>

<mosaic_0001>
module attributes {stable_mosaic.version = 11 : i64} {
  func.func @resblock_kernel(%arg0: i32, %arg1: i32, %arg2: memref<16x128xf32, #tpu.memory_space<vmem>>, %arg3: memref<128x128xf32, #tpu.memory_space<vmem>>, %arg4: memref<1x128xf32, #tpu.memory_space<vmem>>, %arg5: memref<16x128xf32, #tpu.memory_space<vmem>>, %arg6: memref<16x128xf32, #tpu.memory_space<vmem>>) attributes {dimension_semantics = [#tpu.dimension_semantics<parallel>, #tpu.dimension_semantics<parallel>], iteration_bounds = array<i64: 1, 1>, scalar_prefetch = 0 : i64, scratch_operands = 0 : i64, tpu.core_type = #tpu.core_type<tc>, window_params = [{transform_indices = @transform_0, window_bounds = array<i64: 16, 128>}, {transform_indices = @transform_1, window_bounds = array<i64: 128, 128>}, {transform_indices = @transform_2, window_bounds = array<i64: 1, 128>}, {transform_indices = @transform_3, window_bounds = array<i64: 16, 128>}, {transform_indices = @transform_4, window_bounds = array<i64: 16, 128>}]} {
    %c0 = arith.constant 0 : index
    %c0_0 = arith.constant 0 : index
    %0 = vector.load %arg2[%c0, %c0_0] : memref<16x128xf32, #tpu.memory_space<vmem>>, vector<16x128xf32>
    %c0_1 = arith.constant 0 : index
    %c0_2 = arith.constant 0 : index
    %1 = vector.load %arg3[%c0_1, %c0_2] : memref<128x128xf32, #tpu.memory_space<vmem>>, vector<128x128xf32>
    %cst = arith.constant dense<0.000000e+00> : vector<16x128xf32>
    %2 = tpu.matmul %0, %1, %cst {dimension_numbers = #tpu.dot_dimension_numbers<[1], [0], [0], [1], [0, 0, 1, 1], [], []>} : vector<16x128xf32>, vector<128x128xf32>, vector<16x128xf32> -> vector<16x128xf32>
    %c0_3 = arith.constant 0 : index
    %c0_4 = arith.constant 0 : index
    %3 = vector.load %arg4[%c0_3, %c0_4] : memref<1x128xf32, #tpu.memory_space<vmem>>, vector<1x128xf32>
    %4 = vector.broadcast %3 : vector<1x128xf32> to vector<16x128xf32>
    %5 = arith.addf %2, %4 : vector<16x128xf32>
    %6 = arith.negf %5 : vector<16x128xf32>
    %7 = math.exp %6 : vector<16x128xf32>
    %cst_5 = arith.constant 1.000000e+00 : f32
    %8 = vector.broadcast %cst_5 : f32 to vector<16x128xf32>
    %9 = arith.addf %8, %7 : vector<16x128xf32>
    %10 = arith.divf %8, %9 : vector<16x128xf32>
    %11 = arith.mulf %5, %10 : vector<16x128xf32>
    %c0_6 = arith.constant 0 : index
    %c0_7 = arith.constant 0 : index
    %12 = vector.load %arg5[%c0_6, %c0_7] : memref<16x128xf32, #tpu.memory_space<vmem>>, vector<16x128xf32>
    %13 = arith.addf %12, %11 : vector<16x128xf32>
    %c0_8 = arith.constant 0 : index
    %c0_9 = arith.constant 0 : index
    %14 = vector.load %arg6[%c0_8, %c0_9] : memref<16x128xf32, #tpu.memory_space<vmem>>, vector<16x128xf32>
    tpu.vector_store %arg6[%c0_8, %c0_9], %13 {strides = array<i32>} : memref<16x128xf32, #tpu.memory_space<vmem>>, vector<16x128xf32>,
    return
  }
  func.func @transform_0(%arg0: i32, %arg1: i32) -> (i32, i32) {
    %c0_i32 = arith.constant 0 : i32
    %c0_i32_0 = arith.constant 0 : i32
    return %arg0, %c0_i32 : i32, i32
  }
  func.func @transform_1(%arg0: i32, %arg1: i32) -> (i32, i32) {
    %c0_i32 = arith.constant 0 : i32
    %c0_i32_0 = arith.constant 0 : i32
    return %c0_i32, %arg1 : i32, i32
  }
  func.func @transform_2(%arg0: i32, %arg1: i32) -> (i32, i32) {
    %c0_i32 = arith.constant 0 : i32
    %c0_i32_0 = arith.constant 0 : i32
    return %c0_i32, %arg1 : i32, i32
  }
  func.func @transform_3(%arg0: i32, %arg1: i32) -> (i32, i32) {
    %c0_i32 = arith.constant 0 : i32
    return %arg0, %arg1 : i32, i32
  }
  func.func @transform_4(%arg0: i32, %arg1: i32) -> (i32, i32) {
    %c0_i32 = arith.constant 0 : i32
    return %arg0, %arg1 : i32, i32
  }
}

</mosaic_0001>

<bundles_post_ra>
// kernel: tpu_custom_call.1
= control target key start
LH: loop header
LB: loop body
LE: loop exit
PB: predicated region body
PF: predicated region fallthrough
CT: control target
= control target key end

     0   :  { %9 = vsyncpa [#allocation3], 0  ;;  %s369_s0 = inlined_call_operand.hbm [shape: f32[16,128], index: 0, kind: input, shape index: {}]   ;;  %s370_s1 = inlined_call_operand.hbm [shape: f32[128,128], index: 1, kind: input, shape index: {}]   ;;  %s371_s2 = inlined_call_operand.vmem [shape: f32[1,128], index: 2, kind: input, shape index: {}]   ;;  %s372_s3 = inlined_call_operand.hbm [shape: f32[16,128], index: 3, kind: input, shape index: {}]   ;;  %s373_s4 = inlined_call_operand.hbm [shape: f32[16,128], index: 4, kind: output, shape index: {}]  }
   0x1   :  { %10 = vsyncpa [#allocation6], 0 }
   0x2   :  { %11 = vsyncpa [#allocation4], 0  ;;  %s29_s17 = sshll.u32 %s370_s1, 4  ;;  %s311_s18 = smov [#allocation5]   ;;  %s30_s17 = int_to_ptr.hbm [resolvable:$true] %s29_s17 }
   0x3   :  { %s31_s19 = sshll.u32 %s311_s18, 4  ;;  %s16_s22 = sshll.u32 %s369_s0, 4  ;;  %s32_s19 = int_to_ptr.vmem [resolvable:$true] %s31_s19  ;;  %s17_s22 = int_to_ptr.hbm [resolvable:$true] %s16_s22 }
   0x4   :  { %s312_s23 = smov 128   ;;  %s313_s24 = smov 8  }
   0x5   :  { %37 = dma.hbm_to_vmem [thread:$0]  %s30_s17, 2048, %s32_s19, [#allocation6], %s312_s23, %s312_s23, %s313_s24  }
   0x6   :  { %s314_s25 = smov [#allocation2]   ;;  %s44_s1 = sshll.u32 %s372_s3, 4  ;;  %s45_s1 = int_to_ptr.hbm [resolvable:$true] %s44_s1 }
   0x7   :  { %s18_s26 = sshll.u32 %s314_s25, 4  ;;  %s315_s0 = smov [#allocation7]   ;;  %s19_s26 = int_to_ptr.vmem [resolvable:$true] %s18_s26 }
   0x8   :  { %24 = dma.hbm_to_vmem [thread:$0]  %s17_s22, 256, %s19_s26, [#allocation3], %s312_s23, %s312_s23, %s313_s24  }
   0x9   :  { %s46_s29 = sshll.u32 %s315_s0, 4  ;;  %s47_s29 = int_to_ptr.vmem [resolvable:$true] %s46_s29 }
   0xa   :  { %52 = dma.hbm_to_vmem [thread:$0]  %s45_s1, 256, %s47_s29, [#allocation6], %s312_s23, %s312_s23, %s313_s24  }
   0xb   :  { %305 = dma.done.wait [#allocation3], 256  }
   0xc   :  { %306 = vsyncadd [#allocation3], 4294967040 }
   0xd   :  { %307 = dma.done.wait [#allocation6], 2304  }
   0xe   :  { %308 = vsyncadd [#allocation6], 4294964992  ;;  %v82_v0 = vld [vmem:[#allocation5 + $0x78] sm:$0xff]  ;;  %v81_v1 = vld [vmem:[#allocation5 + $0x70] sm:$0xff]  ;;  %s162_s8 = sshll.u32 %s373_s4, 4  ;;  %s163_s8 = int_to_ptr.hbm [resolvable:$true] %s162_s8 }
   0xf   :  { %87 = vmatpush.msra.mxu0 %v82_v0  ;;  %178 = vmatpush.msra.mxu1 %v82_v0  ;;  %v80_v2 = vld [vmem:[#allocation5 + $0x68] sm:$0xff]  ;;  %v79_v3 = vld [vmem:[#allocation5 + $0x60] sm:$0xff]  ;;  %v78_v4 = vld [vmem:[#allocation5 + $0x58] sm:$0xff] }
  0x10   :  { %v77_v5 = vld [vmem:[#allocation5 + $0x50] sm:$0xff]  ;;  %v76_v6 = vld [vmem:[#allocation5 + $0x48] sm:$0xff]  ;;  %v75_v7 = vld [vmem:[#allocation5 + $0x40] sm:$0xff] }
  0x11   :  { %88 = vmatpush.msra.mxu0 %v81_v1  ;;  %179 = vmatpush.msra.mxu1 %v81_v1  ;;  %v74_v8 = vld [vmem:[#allocation5 + $0x38] sm:$0xff]  ;;  %v73_v9 = vld [vmem:[#allocation5 + $0x30] sm:$0xff]  ;;  %v72_v10 = vld [vmem:[#allocation5 + $0x28] sm:$0xff] }
  0x12   :  { %v71_v11 = vld [vmem:[#allocation5 + $0x20] sm:$0xff]  ;;  %v70_v12 = vld [vmem:[#allocation5 + $0x18] sm:$0xff]  ;;  %v69_v13 = vld [vmem:[#allocation5 + $0x10] sm:$0xff] }
  0x13   :  { %89 = vmatpush.msra.mxu0 %v80_v2  ;;  %180 = vmatpush.msra.mxu1 %v80_v2  ;;  %v68_v14 = vld [vmem:[#allocation5 + $0x8] sm:$0xff]  ;;  %v67_v15 = vld [vmem:[#allocation5] sm:$0xff]  ;;  %v65_v16 = vld [vmem:[#allocation2] sm:$0xff] }
  0x14   :  { %v66_v17 = vld [vmem:[#allocation2 + $0x8] sm:$0xff]  ;;  %v200_v18 = vld [vmem:[%s371_s2] ss:$0 sm:$0xff]  ;;  %v150_v47 = vld [vmem:[#allocation7] sm:$0xff]  ;;  %s316_s2 = smov [#allocation8]  }
  0x15   :  { %90 = vmatpush.msra.mxu0 %v79_v3  ;;  %181 = vmatpush.msra.mxu1 %v79_v3  ;;  %v151_v51 = vld [vmem:[#allocation7 + $0x8] sm:$0xff]  ;;  %s160_s5 = sshll.u32 %s316_s2, 4  ;;  %s161_s5 = int_to_ptr.vmem [resolvable:$true] %s160_s5 }
  0x17   :  { %91 = vmatpush.msra.mxu0 %v78_v4  ;;  %182 = vmatpush.msra.mxu1 %v78_v4 }
  0x19   :  { %92 = vmatpush.msra.mxu0 %v77_v5  ;;  %183 = vmatpush.msra.mxu1 %v77_v5 }
  0x1b   :  { %93 = vmatpush.msra.mxu0 %v76_v6  ;;  %184 = vmatpush.msra.mxu1 %v76_v6 }
  0x1d   :  { %94 = vmatpush.msra.mxu0 %v75_v7  ;;  %185 = vmatpush.msra.mxu1 %v75_v7 }
  0x1f   :  { %95 = vmatpush.msra.mxu0 %v74_v8  ;;  %186 = vmatpush.msra.mxu1 %v74_v8 }
  0x21   :  { %96 = vmatpush.msra.mxu0 %v73_v9  ;;  %187 = vmatpush.msra.mxu1 %v73_v9 }
  0x23   :  { %97 = vmatpush.msra.mxu0 %v72_v10  ;;  %188 = vmatpush.msra.mxu1 %v72_v10 }
  0x25   :  { %98 = vmatpush.msra.mxu0 %v71_v11  ;;  %189 = vmatpush.msra.mxu1 %v71_v11 }
  0x27   :  { %99 = vmatpush.msra.mxu0 %v70_v12  ;;  %190 = vmatpush.msra.mxu1 %v70_v12 }
  0x29   :  { %100 = vmatpush.msra.mxu0 %v69_v13  ;;  %191 = vmatpush.msra.mxu1 %v69_v13 }
  0x2b   :  { %101 = vmatpush.msra.mxu0 %v68_v14  ;;  %192 = vmatpush.msra.mxu1 %v68_v14 }
  0x2d   :  { %102 = vmatpush.msra.mxu0 %v67_v15  ;;  %193 = vmatpush.msra.mxu1 %v67_v15 }
  0x2e   :  { %103 = vmatmul.f32.vlgmr.msra.gmra.mxu0 %v65_v16  ;;  %106 = vmatmul.f32.vlgmr.msra.gmra.mxu1 %v66_v17 }
  0xab   :  { %v104_v19 = vpop.f32.mrf.mxu0  ;;  %v107_v20 = vpop.f32.mrf.mxu1 }
  0xac   :  { %v105_v21 = vadd.f32 %v200_v18, %v104_v19  ;;  %v108_v22 = vadd.f32 %v200_v18, %v107_v20 }
  0xae   :  { %v176_v23 = vmul.f32 -1.442695, %v105_v21  ;;  %v177_v24 = vmul.f32 -1.442695, %v108_v22 }
  0xb0   :  { %201 = vpow2.f32 %v176_v23 }
  0xb1   :  { %203 = vpow2.f32 %v177_v24 }
  0xb6   :  { %v202_v25 = vpop.eup %201 }
  0xb7   :  { %v204_v26 = vpop.eup %203  ;;  %v116_v27 = vadd.f32 1.0, %v202_v25 }
  0xb8   :  { %v117_v28 = vadd.f32 1.0, %v204_v26 }
  0xb9   :  { %205 = vrcp.f32 %v116_v27  ;;  %v129_v34 = vand.u32 2147483648, %v116_v27  ;;  %v127_v37 = vand.u32 2147483647, %v116_v27  ;;  %vm123_vm2 = vweird.f32 %v116_v27 }
  0xba   :  { %207 = vrcp.f32 %v117_v28  ;;  %v144_v38 = vand.u32 2147483648, %v117_v28  ;;  %v142_v40 = vand.u32 2147483647, %v117_v28  ;;  %vm138_vm4 = vweird.f32 %v117_v28 }
  0xbb   :  { %v130_v42 = vor.u32 1.1754944e-38, %v129_v34  ;;  %vm128_vm5 = vcmp.eq.f32.partialorder %v127_v37, 8.507059e+37 }
  0xbc   :  { %v145_v45 = vor.u32 1.1754944e-38, %v144_v38  ;;  %vm143_vm7 = vcmp.eq.f32.partialorder %v142_v40, 8.507059e+37 }
  0xbf   :  { %v206_v29 = vpop.eup %205 }
  0xc0   :  { %v208_v30 = vpop.eup %207  ;;  %v119_v31 = vmul.f32 %v206_v29, %v116_v27  ;;  %vm124_vm0 = vweird.f32 %v206_v29 }
  0xc1   :  { %v134_v32 = vmul.f32 %v208_v30, %v117_v28  ;;  %vm139_vm1 = vweird.f32 %v208_v30  ;;  %vm125_vm3 = vmor %vm123_vm2, %vm124_vm0 }
  0xc2   :  { %v120_v33 = vsub.f32 1.0, %v119_v31  ;;  %vm140_vm6 = vmor %vm138_vm4, %vm139_vm1 }
  0xc3   :  { %v135_v35 = vsub.f32 1.0, %v134_v32 }
  0xc4   :  { %v121_v36 = vmul.f32 %v206_v29, %v120_v33 }
  0xc5   :  { %v136_v39 = vmul.f32 %v208_v30, %v135_v35 }
  0xc6   :  { %v122_v41 = vadd.f32 %v206_v29, %v121_v36 }
  0xc7   :  { %v137_v43 = vadd.f32 %v208_v30, %v136_v39 }
  0xc8   :  { %v126_v44 = vsel %vm125_vm3, %v206_v29, %v122_v41 }
  0xc9   :  { %v131_v46 = vsel %vm128_vm5, %v130_v42, %v126_v44  ;;  %v141_v48 = vsel %vm140_vm6, %v208_v30, %v137_v43 }
  0xca   :  { %v148_v49 = vmul.f32 %v131_v46, %v105_v21  ;;  %v146_v50 = vsel %vm143_vm7, %v145_v45, %v141_v48 }
  0xcb   :  { %v149_v52 = vmul.f32 %v146_v50, %v108_v22 }
  0xcc   :  { %v152_v53 = vadd.f32 %v150_v47, %v148_v49 }
  0xcd   :  { %v153_v54 = vadd.f32 %v151_v51, %v149_v52 }
  0xce   :  { %154 = vst [vmem:[#allocation8] sm:$0xff] %v152_v53 }
  0xcf   :  { %155 = vst [vmem:[#allocation8 + $0x8] sm:$0xff] %v153_v54 }
  0xd0   :  { %168 = dma.vmem_to_hbm [thread:$0]  %s161_s5, 256, %s163_s8, [#allocation4], %s312_s23, %s312_s23, %s313_s24  }
  0xd1   :  { %309 = dma.done.wait [#allocation4], 256  }
  0xd2   :  { %310 = vsyncadd [#allocation4], 4294967040 }
  0xd3   :  { %173 = vsyncpa [#allocation3], 1 }
  0xd4   :  { %174 = vsyncpa [#allocation6], 1 }
  0xd5   :  { %175 = vsyncpa [#allocation4], 1 }

</bundles_post_ra>
